<compile_context>
chip_gen: v6e
topology: v6e:2x2x1
jax: 0.10.0
libtpu: 0.0.40
codegen_flags: <defaults>
</compile_context>

<pallas_src>
import jax
import jax.numpy as jnp
from jax.experimental import pallas as pl
from jax.experimental.pallas import tpu as pltpu


def _round_up(x, m):
    return ((x + m - 1) // m) * m


def generator_kernel(z_ref, w1_ref, b1_ref, w2_ref, b2_ref, out_ref):
    """One batch tile of: Linear -> LeakyReLU(0.01) -> Linear -> Tanh.

    Matmul operands are bf16 (native MXU rate); accumulation, bias add,
    LeakyReLU and tanh all run in f32. Hidden activation never leaves vregs/VMEM.
    """
    # Hidden layer: Linear(latent_dim, 256) + LeakyReLU(0.01)
    h = jnp.dot(z_ref[...], w1_ref[...], preferred_element_type=jnp.float32)
    h = h + b1_ref[...]                        # (1, H) broadcast
    h = jnp.where(h >= 0, h, 0.01 * h)         # LeakyReLU(0.01)

    # Output layer: Linear(256, generated_dim) + Tanh
    y = jnp.dot(h.astype(jnp.bfloat16), w2_ref[...],
                preferred_element_type=jnp.float32)
    y = y + b2_ref[...]                        # (1, Gp) broadcast
    out_ref[...] = jnp.tanh(y).astype(out_ref.dtype)


def generator_forward(z, w1, b1, w2, b2, *, block_b=512):
    """z: (B, latent_dim) f32 -> (B, generated_dim) f32."""
    B, L = z.shape
    H = w1.shape[1]
    G = w2.shape[1]

    # Lane-align contraction / output dims (zero padding -> identical math),
    # 8-align and tile the batch. Large batches use a 512-row tile (multiple of
    # the MXU row dim on all of v5e/v6e/v7x); tiny batches run in one step.
    Lp = _round_up(L, 128)
    Gp = _round_up(G, 128)
    TB = min(block_b, _round_up(B, 8))
    Bp = _round_up(B, TB)

    # bf16 matmul operands: native MXU rate and half the HBM traffic. Biases f32.
    zp = jnp.zeros((Bp, Lp), jnp.bfloat16).at[:B, :L].set(z.astype(jnp.bfloat16))
    w1p = jnp.zeros((Lp, H), jnp.bfloat16).at[:L, :].set(w1.astype(jnp.bfloat16))
    w2p = jnp.zeros((H, Gp), jnp.bfloat16).at[:, :G].set(w2.astype(jnp.bfloat16))
    b1p = b1.reshape(1, H).astype(jnp.float32)
    b2p = jnp.zeros((1, Gp), jnp.float32).at[:, :G].set(b2.astype(jnp.float32))

    grid = (Bp // TB,)

    # VMEM budget: double-buffered z (bf16) and out (f32) tiles + resident
    # weights/biases, with 2x headroom, clamped under v7x's 64 MiB physical VMEM.
    vmem_bytes = (2 * TB * Lp * 2 + 2 * TB * Gp * 4
                  + Lp * H * 2 + H * Gp * 2 + (H + Gp) * 4)
    vmem_limit = int(min(max(2 * vmem_bytes, 32 * 1024 * 1024), 64 * 1024 * 1024))

    cost = pl.CostEstimate(
        flops=2 * Bp * (Lp * H + H * Gp),
        transcendentals=Bp * Gp,
        bytes_accessed=(zp.size * 2 + w1p.size * 2 + w2p.size * 2
                        + b1p.size * 4 + b2p.size * 4 + Bp * Gp * 4),
    )

    out = pl.pallas_call(
        generator_kernel,
        out_shape=jax.ShapeDtypeStruct((Bp, Gp), jnp.float32),
        grid_spec=pl.GridSpec(
            grid=grid,
            in_specs=[
                pl.BlockSpec((TB, Lp), lambda i: (i, 0)),  # z tile (pipelined)
                pl.BlockSpec((Lp, H), lambda i: (0, 0)),   # w1 (VMEM-resident)
                pl.BlockSpec((1, H), lambda i: (0, 0)),    # b1 (VMEM-resident)
                pl.BlockSpec((H, Gp), lambda i: (0, 0)),   # w2 (VMEM-resident)
                pl.BlockSpec((1, Gp), lambda i: (0, 0)),   # b2 (VMEM-resident)
            ],
            out_specs=pl.BlockSpec((TB, Gp), lambda i: (i, 0)),
        ),
        compiler_params=pltpu.CompilerParams(
            dimension_semantics=("parallel",),   # v7x: shard batch across both TCs
            vmem_limit_bytes=vmem_limit,
        ),
        cost_estimate=cost,
    )(zp, w1p, b1p, w2p, b2p)

    return out[:B, :G]


def init_params(key, latent_dim, hidden_dim, generated_dim):
    """Deterministic PyTorch-style init: U(-1/sqrt(fan_in), 1/sqrt(fan_in))."""
    k1, k2, k3, k4 = jax.random.split(key, 4)
    bound1 = 1.0 / (latent_dim ** 0.5)
    bound2 = 1.0 / (hidden_dim ** 0.5)
    w1 = jax.random.uniform(k1, (latent_dim, hidden_dim), jnp.float32, -bound1, bound1)
    b1 = jax.random.uniform(k2, (hidden_dim,), jnp.float32, -bound1, bound1)
    w2 = jax.random.uniform(k3, (hidden_dim, generated_dim), jnp.float32, -bound2, bound2)
    b2 = jax.random.uniform(k4, (generated_dim,), jnp.float32, -bound2, bound2)
    return w1, b1, w2, b2


if __name__ == "__main__":
    # Small shapes consistent with the module: latent vector -> 256 hidden -> generated vector.
    # GEN=100 deliberately exercises the pad-to-128 / slice-back output path.
    B, LATENT, HIDDEN, GEN = 8, 64, 256, 100

    key = jax.random.PRNGKey(0)
    kz, kp = jax.random.split(key)
    z = jax.random.normal(kz, (B, LATENT), jnp.float32)
    w1, b1, w2, b2 = init_params(kp, LATENT, HIDDEN, GEN)

    out = jax.block_until_ready(generator_forward(z, w1, b1, w2, b2))

    # Pure-JAX f32 reference of the forward semantics (bf16 operands => looser tol).
    h_ref = z @ w1 + b1
    h_ref = jnp.where(h_ref >= 0, h_ref, 0.01 * h_ref)
    ref = jnp.tanh(h_ref @ w2 + b2)
    assert out.shape == (B, GEN)
    assert jnp.allclose(out, ref, atol=2e-2, rtol=2e-2)

    print("KERNEL_OK")
</pallas_src>

<mosaic_0001>
module attributes {stable_mosaic.version = 11 : i64} {
  func.func @generator_kernel(%arg0: i32, %arg1: memref<8x128xbf16, #tpu.memory_space<vmem>>, %arg2: memref<128x256xbf16, #tpu.memory_space<vmem>>, %arg3: memref<1x256xf32, #tpu.memory_space<vmem>>, %arg4: memref<256x128xbf16, #tpu.memory_space<vmem>>, %arg5: memref<1x128xf32, #tpu.memory_space<vmem>>, %arg6: memref<8x128xf32, #tpu.memory_space<vmem>>) attributes {dimension_semantics = [#tpu.dimension_semantics<parallel>], iteration_bounds = array<i64: 1>, scalar_prefetch = 0 : i64, scratch_operands = 0 : i64, tpu.core_type = #tpu.core_type<tc>, window_params = [{transform_indices = @transform_0, window_bounds = array<i64: 8, 128>}, {pipeline_mode = #tpu.pipeline_mode<synchronous>, transform_indices = @transform_1, window_bounds = array<i64: 128, 256>}, {pipeline_mode = #tpu.pipeline_mode<synchronous>, transform_indices = @transform_2, window_bounds = array<i64: 1, 256>}, {pipeline_mode = #tpu.pipeline_mode<synchronous>, transform_indices = @transform_3, window_bounds = array<i64: 256, 128>}, {pipeline_mode = #tpu.pipeline_mode<synchronous>, transform_indices = @transform_4, window_bounds = array<i64: 1, 128>}, {transform_indices = @transform_5, window_bounds = array<i64: 8, 128>}]} {
    %c0 = arith.constant 0 : index
    %c0_0 = arith.constant 0 : index
    %0 = vector.load %arg1[%c0, %c0_0] : memref<8x128xbf16, #tpu.memory_space<vmem>>, vector<8x128xbf16>
    %c0_1 = arith.constant 0 : index
    %c0_2 = arith.constant 0 : index
    %1 = vector.load %arg2[%c0_1, %c0_2] : memref<128x256xbf16, #tpu.memory_space<vmem>>, vector<128x256xbf16>
    %cst = arith.constant dense<0.000000e+00> : vector<8x256xf32>
    %2 = tpu.matmul %0, %1, %cst {dimension_numbers = #tpu.dot_dimension_numbers<[1], [0], [0], [1], [0, 0, 1, 1], [], []>} : vector<8x128xbf16>, vector<128x256xbf16>, vector<8x256xf32> -> vector<8x256xf32>
    %c0_3 = arith.constant 0 : index
    %c0_4 = arith.constant 0 : index
    %3 = vector.load %arg3[%c0_3, %c0_4] : memref<1x256xf32, #tpu.memory_space<vmem>>, vector<1x256xf32>
    %4 = vector.broadcast %3 : vector<1x256xf32> to vector<8x256xf32>
    %5 = arith.addf %2, %4 : vector<8x256xf32>
    %cst_5 = arith.constant 0.000000e+00 : f32
    %6 = vector.broadcast %cst_5 : f32 to vector<8x256xf32>
    %7 = arith.cmpf oge, %5, %6 : vector<8x256xf32>
    %cst_6 = arith.constant 0.00999999977 : f32
    %8 = vector.broadcast %cst_6 : f32 to vector<8x256xf32>
    %9 = arith.mulf %8, %5 : vector<8x256xf32>
    %10 = arith.select %7, %5, %9 : vector<8x256xi1>, vector<8x256xf32>
    %11 = arith.truncf %10 : vector<8x256xf32> to vector<8x256xbf16>
    %c0_7 = arith.constant 0 : index
    %c0_8 = arith.constant 0 : index
    %12 = vector.load %arg4[%c0_7, %c0_8] : memref<256x128xbf16, #tpu.memory_space<vmem>>, vector<256x128xbf16>
    %cst_9 = arith.constant dense<0.000000e+00> : vector<8x128xf32>
    %13 = tpu.matmul %11, %12, %cst_9 {dimension_numbers = #tpu.dot_dimension_numbers<[1], [0], [0], [1], [0, 0, 1, 1], [], []>} : vector<8x256xbf16>, vector<256x128xbf16>, vector<8x128xf32> -> vector<8x128xf32>
    %c0_10 = arith.constant 0 : index
    %c0_11 = arith.constant 0 : index
    %14 = vector.load %arg5[%c0_10, %c0_11] : memref<1x128xf32, #tpu.memory_space<vmem>>, vector<1x128xf32>
    %15 = vector.broadcast %14 : vector<1x128xf32> to vector<8x128xf32>
    %16 = arith.addf %13, %15 : vector<8x128xf32>
    %17 = math.tanh %16 : vector<8x128xf32>
    %c0_12 = arith.constant 0 : index
    %c0_13 = arith.constant 0 : index
    %18 = vector.load %arg6[%c0_12, %c0_13] : memref<8x128xf32, #tpu.memory_space<vmem>>, vector<8x128xf32>
    tpu.vector_store %arg6[%c0_12, %c0_13], %17 {strides = array<i32>} : memref<8x128xf32, #tpu.memory_space<vmem>>, vector<8x128xf32>,
    return
  }
  func.func @transform_0(%arg0: i32) -> (i32, i32) {
    %c0_i32 = arith.constant 0 : i32
    %c0_i32_0 = arith.constant 0 : i32
    return %arg0, %c0_i32 : i32, i32
  }
  func.func @transform_1(%arg0: i32) -> (i32, i32) {
    %c0_i32 = arith.constant 0 : i32
    %c0_i32_0 = arith.constant 0 : i32
    %c0_i32_1 = arith.constant 0 : i32
    return %c0_i32, %c0_i32_0 : i32, i32
  }
  func.func @transform_2(%arg0: i32) -> (i32, i32) {
    %c0_i32 = arith.constant 0 : i32
    %c0_i32_0 = arith.constant 0 : i32
    %c0_i32_1 = arith.constant 0 : i32
    return %c0_i32, %c0_i32_0 : i32, i32
  }
  func.func @transform_3(%arg0: i32) -> (i32, i32) {
    %c0_i32 = arith.constant 0 : i32
    %c0_i32_0 = arith.constant 0 : i32
    %c0_i32_1 = arith.constant 0 : i32
    return %c0_i32, %c0_i32_0 : i32, i32
  }
  func.func @transform_4(%arg0: i32) -> (i32, i32) {
    %c0_i32 = arith.constant 0 : i32
    %c0_i32_0 = arith.constant 0 : i32
    %c0_i32_1 = arith.constant 0 : i32
    return %c0_i32, %c0_i32_0 : i32, i32
  }
  func.func @transform_5(%arg0: i32) -> (i32, i32) {
    %c0_i32 = arith.constant 0 : i32
    %c0_i32_0 = arith.constant 0 : i32
    return %arg0, %c0_i32 : i32, i32
  }
}

</mosaic_0001>

<bundles_post_ra>
// kernel: tpu_custom_call.1
= control target key start
LH: loop header
LB: loop body
LE: loop exit
PB: predicated region body
PF: predicated region fallthrough
CT: control target
= control target key end

     0   :  { %10 = vsyncpa [#allocation3], 0  ;;  %s661_s0 = inlined_call_operand.hbm [shape: bf16[8,128], index: 0, kind: input, shape index: {}]   ;;  %s662_s1 = inlined_call_operand.hbm [shape: bf16[128,256], index: 1, kind: input, shape index: {}]   ;;  %s663_s2 = inlined_call_operand.vmem [shape: f32[1,256], index: 2, kind: input, shape index: {}]   ;;  %s664_s3 = inlined_call_operand.hbm [shape: bf16[256,128], index: 3, kind: input, shape index: {}]   ;;  %s665_s4 = inlined_call_operand.vmem [shape: f32[1,128], index: 4, kind: input, shape index: {}]   ;;  %s666_s5 = inlined_call_operand.hbm [shape: f32[8,128], index: 5, kind: output, shape index: {}]  }
   0x1   :  { %11 = vsyncpa [#allocation6], 0 }
   0x2   :  { %12 = vsyncpa [#allocation4], 0  ;;  %s604_s18 = smov [#allocation5]  }
   0x3   :  { %s28_s19 = sshll.u32 %s604_s18, 4  ;;  %s29_s19 = int_to_ptr.vmem [resolvable:$true] %s28_s19 }
   0x4   :  { %s526_s20 = scalar_lea.vmem %s29_s19, 2048  ;;  %p531_p1 = scmp.lt.s32.totalorder %s29_s19, %s29_s19 }
   0x5   :  { %p527_p0 = scmp.ne.s32.totalorder %s29_s19, %s526_s20  ;;  %p532_p2 = scmp.lt.s32.totalorder %s526_s20, %s526_s20 }
   0x7   :  { %p533_p3 = por %p532_p2, %p531_p1 }
   0x9   :  { %p534_p4 = pnand %p533_p3, %p527_p0 }
   0xb   :  { %537 = shalt.err (!%p534_p4)
}
   0xc   :  { %s605_s21 = smov 128   ;;  %s606_s22 = smov 8  }
   0xd   :  { %34 = dma.hbm_to_vmem [thread:$0]  %s662_s1, 2048, %s29_s19, [#allocation6], %s605_s21, %s605_s21, %s606_s22  }
   0xe   :  { %s607_s25 = smov [#allocation2]   ;;  %s608_s27 = smov [#allocation7]  }
   0xf   :  { %s19_s26 = sshll.u32 %s607_s25, 4  ;;  %s42_s28 = sshll.u32 %s608_s27, 4  ;;  %s20_s26 = int_to_ptr.vmem [resolvable:$true] %s19_s26  ;;  %s43_s28 = int_to_ptr.vmem [resolvable:$true] %s42_s28 }
  0x10   :  { %s546_s29 = scalar_lea.vmem %s20_s26, 64  ;;  %p551_p6 = scmp.lt.s32.totalorder %s20_s26, %s20_s26 }
  0x11   :  { %p547_p5 = scmp.ne.s32.totalorder %s20_s26, %s546_s29  ;;  %p552_p7 = scmp.lt.s32.totalorder %s546_s29, %s546_s29 }
  0x13   :  { %p553_p8 = por %p552_p7, %p551_p6 }
  0x15   :  { %p554_p9 = pnand %p553_p8, %p547_p5 }
  0x17   :  { %557 = shalt.err (!%p554_p9)
}
  0x18   :  { %22 = dma.hbm_to_vmem [thread:$0]  %s661_s0, 64, %s20_s26, [#allocation3]  }
  0x19   :  { %s566_s7 = scalar_lea.vmem %s43_s28, 2048  ;;  %p571_p11 = scmp.lt.s32.totalorder %s43_s28, %s43_s28 }
  0x1a   :  { %p567_p10 = scmp.ne.s32.totalorder %s43_s28, %s566_s7  ;;  %p572_p12 = scmp.lt.s32.totalorder %s566_s7, %s566_s7 }
  0x1c   :  { %p573_p13 = por %p572_p12, %p571_p11 }
  0x1e   :  { %p574_p0 = pnand %p573_p13, %p567_p10 }
  0x20   :  { %577 = shalt.err (!%p574_p0)
}
  0x21   :  { %s609_s1 = smov 64   ;;  %s610_s8 = smov 4  }
  0x22   :  { %48 = dma.hbm_to_vmem [thread:$0]  %s664_s3, 2048, %s43_s28, [#allocation6], %s609_s1, %s609_s1, %s610_s8  }
  0x23   :  { %598 = dma.done.wait [#allocation3], 64  }
  0x24   :  { %599 = vsyncadd [#allocation3], 4294967232 }
  0x25   :  { %600 = dma.done.wait [#allocation6], 4096  }
  0x26   :  { %601 = vsyncadd [#allocation6], 4294963200  ;;  %v611_v0 = vmov 0   ;;  %v476_v1 = vld [vmem:[#allocation5 + $0x74] ss:$8 sps:$4 sm:$0xff]   ;;  %v504_v15 = vld [vmem:[#allocation7 + $0x68] sm:$0xff]   ;;  %v80_v34 = vlaneseq }
  0x27   :  { %202 = vmatprep.mubr.bf16.mxu0 %v611_v0  ;;  %v478_v2 = vld [vmem:[#allocation5 + $0x70] ss:$8 sps:$4 sm:$0xff]   ;;  %170 = vmatprep.subr.bf16.mxu0 %v476_v1  ;;  %v479_v3 = vld [vmem:[#allocation5 + $0x64] ss:$8 sps:$4 sm:$0xff]   ;;  %v481_v4 = vld [vmem:[#allocation5 + $0x60] ss:$8 sps:$4 sm:$0xff]  }
  0x28   :  { %171 = vmatpush1.bf16.msra.mxu0 %v478_v2  ;;  %v482_v5 = vld [vmem:[#allocation5 + $0x54] ss:$8 sps:$4 sm:$0xff]   ;;  %v484_v6 = vld [vmem:[#allocation5 + $0x50] ss:$8 sps:$4 sm:$0xff]   ;;  %v485_v7 = vld [vmem:[#allocation5 + $0x44] ss:$8 sps:$4 sm:$0xff]  }
  0x29   :  { %172 = vmatprep.subr.bf16.mxu0 %v479_v3  ;;  %v487_v8 = vld [vmem:[#allocation5 + $0x40] ss:$8 sps:$4 sm:$0xff]   ;;  %v488_v9 = vld [vmem:[#allocation5 + $0x34] ss:$8 sps:$4 sm:$0xff]   ;;  %v490_v12 = vld [vmem:[#allocation5 + $0x30] ss:$8 sps:$4 sm:$0xff]  }
  0x2a   :  { %v500_v10 = vld [vmem:[#allocation7 + $0x78] sm:$0xff]   ;;  %v502_v13 = vld [vmem:[#allocation7 + $0x70] sm:$0xff]   ;;  %v491_v16 = vld [vmem:[#allocation5 + $0x24] ss:$8 sps:$4 sm:$0xff]   ;;  %v81_v35 = vshrl.u32 %v80_v34, 7  ;;  %s612_s12 = smov [#allocation8]  }
  0x2b   :  { %v501_v11 = vld [vmem:[#allocation7 + $0x38] sm:$0xff]   ;;  %445 = vmatprep.subr.bf16.mxu1 %v500_v10  ;;  %v503_v14 = vld [vmem:[#allocation7 + $0x30] sm:$0xff]   ;;  %v493_v17 = vld [vmem:[#allocation5 + $0x20] ss:$8 sps:$4 sm:$0xff]   ;;  %s402_s13 = sshll.u32 %s612_s12, 4  ;;  %s403_s13 = int_to_ptr.vmem [resolvable:$true] %s402_s13 }
  0x2c   :  { %173 = vmatpush1.bf16.msra.mxu0 %v481_v4  ;;  %446 = vmatpush3.bf16.msra.mxu1 %v501_v11  ;;  %v505_v18 = vld [vmem:[#allocation7 + $0x28] sm:$0xff]   ;;  %v506_v19 = vld [vmem:[#allocation7 + $0x60] sm:$0xff]   ;;  %v494_v20 = vld [vmem:[#allocation5 + $0x14] ss:$8 sps:$4 sm:$0xff]   ;;  %v82_v36 = vsub.s32 0, %v81_v35  ;;  %v86_v38 = vsub.s32 1, %v81_v35  ;;  %p583_p2 = scmp.lt.s32.totalorder %s403_s13, %s403_s13 }
  0x2d   :  { %174 = vmatprep.subr.bf16.mxu0 %v482_v5  ;;  %447 = vmatprep.subr.bf16.mxu1 %v502_v13  ;;  %v496_v21 = vld [vmem:[#allocation5 + $0x10] ss:$8 sps:$4 sm:$0xff]   ;;  %v507_v22 = vld [vmem:[#allocation7 + $0x20] sm:$0xff]   ;;  %v61_v28 = vld [vmem:[#allocation2] sm:$0xf]  ;;  %s578_s14 = scalar_lea.vmem %s403_s13, 128 }
  0x2e   :  { %v497_v23 = vld [vmem:[#allocation5 + $0x4] ss:$8 sps:$4 sm:$0xff]   ;;  %v508_v24 = vld [vmem:[#allocation7 + $0x58] sm:$0xff]   ;;  %v499_v26 = vld [vmem:[#allocation5] ss:$8 sps:$4 sm:$0xff]   ;;  %p579_p1 = scmp.ne.s32.totalorder %s403_s13, %s578_s14  ;;  %p584_p3 = scmp.lt.s32.totalorder %s578_s14, %s578_s14 }
  0x2f   :  { %v509_v25 = vld [vmem:[#allocation7 + $0x18] sm:$0xff]   ;;  %v510_v27 = vld [vmem:[#allocation7 + $0x50] sm:$0xff]   ;;  %v512_v30 = vld [vmem:[#allocation7 + $0x48] sm:$0xff]  }
  0x30   :  { %175 = vmatpush1.bf16.msra.mxu0 %v484_v6  ;;  %448 = vmatpush3.bf16.msra.mxu1 %v503_v14  ;;  %v511_v29 = vld [vmem:[#allocation7 + $0x10] sm:$0xff]   ;;  %v513_v31 = vld [vmem:[#allocation7 + $0x8] sm:$0xff]   ;;  %v514_v32 = vld [vmem:[#allocation7 + $0x40] sm:$0xff]   ;;  %p585_p4 = por %p584_p3, %p583_p2 }
  0x31   :  { %176 = vmatprep.subr.bf16.mxu0 %v485_v7  ;;  %449 = vmatprep.subr.bf16.mxu1 %v504_v15  ;;  %v515_v33 = vld [vmem:[#allocation7] sm:$0xff]   ;;  %v78_v37 = vld [vmem:[%s663_s2] sm:$0x3] }
  0x32   :  { %v83_v39 = vrot.slane %v78_v37, %v82_v36  ;;  %v87_v40 = vrot.slane %v78_v37, %v86_v38  ;;  %v428_v54 = vld [vmem:[%s665_s4] ss:$0 sm:$0xff]  ;;  %p586_p5 = pnand %p585_p4, %p579_p1 }
  0x34   :  { %177 = vmatpush1.bf16.msra.mxu0 %v487_v8  ;;  %450 = vmatpush3.bf16.msra.mxu1 %v505_v18 }
  0x35   :  { %178 = vmatprep.subr.bf16.mxu0 %v488_v9  ;;  %451 = vmatprep.subr.bf16.mxu1 %v506_v19 }
  0x38   :  { %179 = vmatpush1.bf16.msra.mxu0 %v490_v12  ;;  %452 = vmatpush3.bf16.msra.mxu1 %v507_v22 }
  0x39   :  { %180 = vmatprep.subr.bf16.mxu0 %v491_v16  ;;  %453 = vmatprep.subr.bf16.mxu1 %v508_v24 }
  0x3c   :  { %181 = vmatpush1.bf16.msra.mxu0 %v493_v17  ;;  %454 = vmatpush3.bf16.msra.mxu1 %v509_v25 }
  0x3d   :  { %182 = vmatprep.subr.bf16.mxu0 %v494_v20  ;;  %455 = vmatprep.subr.bf16.mxu1 %v510_v27 }
  0x40   :  { %183 = vmatpush1.bf16.msra.mxu0 %v496_v21  ;;  %456 = vmatpush3.bf16.msra.mxu1 %v511_v29 }
  0x41   :  { %184 = vmatprep.subr.bf16.mxu0 %v497_v23  ;;  %457 = vmatprep.subr.bf16.mxu1 %v512_v30 }
  0x44   :  { %185 = vmatpush1.bf16.msra.mxu0 %v499_v26  ;;  %458 = vmatpush3.bf16.msra.mxu1 %v513_v31 }
  0x45   :  { %459 = vmatprep.subr.bf16.mxu1 %v514_v32 }
  0x47   :  { %203 = vmatmul.mubr.bf16.vlgmr.msra.gmra.mxu0 %v61_v28 }
  0x48   :  { %460 = vmatpush3.bf16.msra.mxu1 %v515_v33 }
 0x107   :  { %v204_v41 = vpop.f32.mrf.mxu0 }
 0x108   :  { %v205_v42 = vadd.f32 %v204_v41, %v83_v39 }
 0x109   :  { %v206_v43 = vpop.f32.mrf.mxu0 }
 0x10a   :  { %vm211_vm0 = vcmp.ge.f32.partialorder %v205_v42, 0.0  ;;  %v213_v44 = vmul.f32 0.01, %v205_v42  ;;  %v207_v45 = vadd.f32 %v206_v43, %v87_v40 }
 0x10b   :  { %v208_v46 = vpop.f32.mrf.mxu0 }
 0x10c   :  { %vm212_vm1 = vcmp.ge.f32.partialorder %v207_v45, 0.0  ;;  %v214_v47 = vmul.f32 0.01, %v207_v45  ;;  %v215_v49 = vsel %vm211_vm0, %v205_v42, %v213_v44 }
 0x10d   :  { %v209_v48 = vpop.f32.mrf.mxu0  ;;  %v217_v52 = vpack.c.bf16 %v215_v49, %v215_v49 }
 0x10e   :  { %v216_v50 = vsel %vm212_vm1, %v207_v45, %v214_v47 }
 0x10f   :  { %v218_v51 = vpack.c.bf16 %v216_v50, %v216_v50 }
 0x111   :  { %386 = vmatprep.mubr.bf16.mxu1 %v218_v51 }
 0x112   :  { %387 = vmatmul.mubr.bf16.vlgmr.msra.gmra.mxu1 %v217_v52 }
 0x1d2   :  { %v461_v53 = vpop.f32.mrf.mxu1 }
 0x1d4   :  { %v462_v55 = vpop.f32.mrf.mxu1 }
 0x1d5   :  { %v463_v56 = vadd.f32 %v462_v55, %v461_v53 }
 0x1d6   :  { %v464_v57 = vpop.f32.mrf.mxu1 }
 0x1d7   :  { %v389_v58 = vadd.f32 %v463_v56, %v428_v54 }
 0x1d8   :  { %v465_v59 = vpop.f32.mrf.mxu1 }
 0x1d9   :  { %516 = vtanh.f32 %v389_v58 }
 0x1e6   :  { %v517_v60 = vpop.eup %516 }
 0x1e7   :  { %395 = vst [vmem:[#allocation8] sm:$0xff] %v517_v60 }
 0x1e8   :  { %589 = shalt.err (!%p586_p5)
}
 0x1e9   :  { %405 = dma.vmem_to_hbm [thread:$0]  %s403_s13, 128, %s666_s5, [#allocation4]  }
 0x1ea   :  { %602 = dma.done.wait [#allocation4], 128  }
 0x1eb   :  { %603 = vsyncadd [#allocation4], 4294967168 }
 0x1ec   :  { %409 = vsyncpa [#allocation3], 1 }
 0x1ed   :  { %410 = vsyncpa [#allocation6], 1 }
 0x1ee   :  { %411 = vsyncpa [#allocation4], 1 }

</bundles_post_ra>
